<compile_context>
chip_gen: v5e
topology: v5e:2x2
jax: 0.10.0
libtpu: 0.0.40
codegen_flags: <defaults>
</compile_context>

<pallas_src>
import functools

import jax
import jax.numpy as jnp
from jax import lax
from jax.experimental import pallas as pl
from jax.experimental.pallas import tpu as pltpu

EPS_NORM = 1e-12   # F.normalize eps
EPS_BN = 1e-5      # nn.BatchNorm1d eps
LANE = 128


def _round_up(n, m):
    return ((n + m - 1) // m) * m


# ---------------------------------------------------------------------------
# Kernel body: one (view, head) grid step.
# Refs (leading squeezed dims dropped by BlockSpec):
#   x_ref    (B, in_dim)        wenc_ref (in_dim, Fpad)   wlab_ref (Fpad, Lpad)
#   w1_ref   (Fpad, Hpad)       bn_ref   (3, Hpad)        w2_ref   (Hpad, Ppad)
#   b2_ref   (1, Ppad)          wp_ref   (Ppad, Upad)
#   feats_ref(B, Fpad)  lab_ref(B, Lpad)  unlab_ref(B, Upad)  proj_ref(B, Ppad)
#   feat_sc  (B, Fpad) f32 scratch, persists across the head axis.
# ---------------------------------------------------------------------------
def fused_net_kernel(x_ref, wenc_ref, wlab_ref, w1_ref, bn_ref, w2_ref, b2_ref,
                     wp_ref, feats_ref, lab_ref, unlab_ref, proj_ref, feat_sc,
                     *, compute_dtype):
    cd = compute_dtype
    eps2 = EPS_NORM * EPS_NORM   # rsqrt(max(||x||^2, eps^2)) == 1 / max(||x||, eps)

    # ---- encoder + labeled prototype head: once per view (head == 0) ----
    @pl.when(pl.program_id(1) == 0)
    def _():
        feats = jnp.dot(x_ref[...].astype(cd), wenc_ref[...],
                        preferred_element_type=jnp.float32)          # (B, Fpad), pad cols = 0
        feat_sc[...] = feats
        feats_ref[...] = feats
        inv_f = lax.rsqrt(jnp.maximum(jnp.sum(feats * feats, axis=-1, keepdims=True), eps2))
        lab_ref[...] = jnp.dot((feats * inv_f).astype(cd), wlab_ref[...],
                               preferred_element_type=jnp.float32)   # (B, Lpad)

    # ---- projector head h on this view ----
    feats = feat_sc[...]
    bn = bn_ref[...]                                                 # rows: b1 / gamma / beta
    z = jnp.dot(feats.astype(cd), w1_ref[...],
                preferred_element_type=jnp.float32) + bn[0:1, :]     # (B, Hpad)

    # BatchNorm1d (training mode, biased variance) over this view's batch only.
    mean = jnp.mean(z, axis=0, keepdims=True)
    var = jnp.mean((z - mean) * (z - mean), axis=0, keepdims=True)
    zb = (z - mean) * lax.rsqrt(var + EPS_BN)
    zb = jnp.maximum(zb * bn[1:2, :] + bn[2:3, :], 0.0)              # affine + ReLU

    z2 = jnp.dot(zb.astype(cd), w2_ref[...],
                 preferred_element_type=jnp.float32) + b2_ref[...]   # (B, Ppad)

    inv_p = lax.rsqrt(jnp.maximum(jnp.sum(z2 * z2, axis=-1, keepdims=True), eps2))
    zn = z2 * inv_p                                                  # F.normalize(z2)
    proj_ref[...] = zn
    unlab_ref[...] = jnp.dot(zn.astype(cd), wp_ref[...],
                             preferred_element_type=jnp.float32)     # (B, Upad)


# ---------------------------------------------------------------------------
# One-time parameter packing: transpose to (in, out), pad lanes to 128, keep a
# leading head axis (per-head weights), pre-cast matmul weights to compute_dtype.
# ---------------------------------------------------------------------------
def prepare_params(params, *, compute_dtype=jnp.float32):
    f32 = jnp.float32
    cd = compute_dtype
    w_enc = params["w_enc"].astype(f32)   # (feat, in)
    w_lab = params["w_lab"].astype(f32)   # (L, feat)
    w1 = params["w1"].astype(f32)         # (H, hidden, feat)
    w2 = params["w2"].astype(f32)         # (H, proj, hidden)
    wp = params["wp"].astype(f32)         # (H, U, proj)

    H, hidden_dim, feat_dim = w1.shape
    in_dim = w_enc.shape[1]
    num_labeled = w_lab.shape[0]
    proj_dim = w2.shape[1]
    num_unlab = wp.shape[1]

    Fpad = _round_up(feat_dim, LANE)
    Lpad = _round_up(num_labeled, LANE)
    Hpad = _round_up(hidden_dim, LANE)
    Ppad = _round_up(proj_dim, LANE)
    Upad = _round_up(num_unlab, LANE)

    wenc_t = jnp.zeros((in_dim, Fpad), f32).at[:, :feat_dim].set(w_enc.T).astype(cd)
    wlab_t = jnp.zeros((Fpad, Lpad), f32).at[:feat_dim, :num_labeled].set(w_lab.T).astype(cd)
    w1_t = jnp.zeros((H, Fpad, Hpad), f32).at[:, :feat_dim, :hidden_dim].set(
        jnp.transpose(w1, (0, 2, 1))).astype(cd)
    w2_t = jnp.zeros((H, Hpad, Ppad), f32).at[:, :hidden_dim, :proj_dim].set(
        jnp.transpose(w2, (0, 2, 1))).astype(cd)
    wp_t = jnp.zeros((H, Ppad, Upad), f32).at[:, :proj_dim, :num_unlab].set(
        jnp.transpose(wp, (0, 2, 1))).astype(cd)

    # BN/bias parameters stay f32 (they are added to f32 accumulators).
    bn_pack = jnp.zeros((H, 3, Hpad), f32)
    bn_pack = bn_pack.at[:, 0, :hidden_dim].set(params["b1"].astype(f32))
    bn_pack = bn_pack.at[:, 1, :hidden_dim].set(params["g1"].astype(f32))
    bn_pack = bn_pack.at[:, 2, :hidden_dim].set(params["be1"].astype(f32))
    b2_pack = jnp.zeros((H, 1, Ppad), f32).at[:, 0, :proj_dim].set(params["b2"].astype(f32))

    kp = dict(wenc=wenc_t, wlab=wlab_t, w1=w1_t, bn=bn_pack, w2=w2_t, b2=b2_pack, wp=wp_t)
    dims = dict(in_dim=in_dim, feat_dim=feat_dim, num_labeled=num_labeled,
                hidden_dim=hidden_dim, proj_dim=proj_dim, num_unlab=num_unlab, H=H,
                Fpad=Fpad, Lpad=Lpad, Hpad=Hpad, Ppad=Ppad, Upad=Upad)
    return kp, dims


# ---------------------------------------------------------------------------
# Wrapper: one pallas_call over grid = (views, heads)
# ---------------------------------------------------------------------------
def _forward_views(x3d, kp, dims, compute_dtype, vmem_limit_bytes):
    V, B, in_dim = x3d.shape
    H = dims["H"]
    Fpad, Lpad, Hpad, Ppad, Upad = (dims[k] for k in ("Fpad", "Lpad", "Hpad", "Ppad", "Upad"))

    # Advisory cost estimate (helps XLA schedule the surrounding slices).
    flops = (2 * V * B * (in_dim * Fpad + Fpad * Lpad)
             + 2 * V * H * B * (Fpad * Hpad + Hpad * Ppad + Ppad * Upad))
    wbytes = jnp.dtype(compute_dtype).itemsize * (
        in_dim * Fpad + Fpad * Lpad + H * (Fpad * Hpad + Hpad * Ppad + Ppad * Upad))
    abytes = 4 * V * B * (in_dim + Fpad + Lpad + H * (Ppad + Upad))
    ce = pl.CostEstimate(flops=flops,
                         transcendentals=V * B + V * H * (B + Hpad),
                         bytes_accessed=wbytes + abytes)

    kernel = functools.partial(fused_net_kernel, compute_dtype=compute_dtype)
    wconst = lambda v, h: (0, 0)

    feats_p, lab_p, unlab_p, proj_p = pl.pallas_call(
        kernel,
        grid=(V, H),
        in_specs=[
            pl.BlockSpec((None, B, in_dim), lambda v, h: (v, 0, 0)),   # x, per view
            pl.BlockSpec((in_dim, Fpad), wconst),                      # encoder weight (resident)
            pl.BlockSpec((Fpad, Lpad), wconst),                        # labeled prototypes (resident)
            pl.BlockSpec((None, Fpad, Hpad), lambda v, h: (h, 0, 0)),  # per-head W1
            pl.BlockSpec((None, 3, Hpad), lambda v, h: (h, 0, 0)),     # per-head b1/gamma/beta
            pl.BlockSpec((None, Hpad, Ppad), lambda v, h: (h, 0, 0)),  # per-head W2
            pl.BlockSpec((None, 1, Ppad), lambda v, h: (h, 0, 0)),     # per-head b2
            pl.BlockSpec((None, Ppad, Upad), lambda v, h: (h, 0, 0)),  # per-head prototypes
        ],
        out_specs=[
            pl.BlockSpec((None, B, Fpad), lambda v, h: (v, 0, 0)),          # feats (resident over h)
            pl.BlockSpec((None, B, Lpad), lambda v, h: (v, 0, 0)),          # logits_lab (resident over h)
            pl.BlockSpec((None, None, B, Upad), lambda v, h: (v, h, 0, 0)),  # logits_unlab
            pl.BlockSpec((None, None, B, Ppad), lambda v, h: (v, h, 0, 0)),  # proj_feats_unlab
        ],
        out_shape=(
            jax.ShapeDtypeStruct((V, B, Fpad), jnp.float32),
            jax.ShapeDtypeStruct((V, B, Lpad), jnp.float32),
            jax.ShapeDtypeStruct((V, H, B, Upad), jnp.float32),
            jax.ShapeDtypeStruct((V, H, B, Ppad), jnp.float32),
        ),
        scratch_shapes=[pltpu.VMEM((B, Fpad), jnp.float32)],
        compiler_params=pltpu.CompilerParams(
            dimension_semantics=("parallel", "arbitrary"),
            vmem_limit_bytes=vmem_limit_bytes),
        cost_estimate=ce,
    )(x3d, kp["wenc"], kp["wlab"], kp["w1"], kp["bn"], kp["w2"], kp["b2"], kp["wp"])

    # Slice off lane padding outside the kernel (layout plumbing only).
    feats = feats_p[:, :, :dims["feat_dim"]]
    lab = lab_p[:, :, :dims["num_labeled"]]
    unlab = unlab_p[:, :, :, :dims["num_unlab"]]
    proj = proj_p[:, :, :, :dims["proj_dim"]]
    return feats, lab, unlab, proj


def net_forward(views, prepared, *, compute_dtype=jnp.float32, vmem_limit_bytes=None):
    """Mirrors Net.forward: accepts a single array or a list of views.

    Weights must have been packed with prepare_params(..., compute_dtype=compute_dtype).
    compute_dtype=jnp.bfloat16 halves weight DMA and uses the bf16 MXU path
    (validate tolerance separately); default f32 matches torch numerics.
    """
    kp, dims = prepared
    if isinstance(views, (list, tuple)):
        B = views[0].shape[0]
        x3d = jnp.stack([v.reshape(B, -1) for v in views], axis=0)
        feats, lab, unlab, proj = _forward_views(x3d, kp, dims, compute_dtype, vmem_limit_bytes)
        return {"feats": feats, "logits_lab": lab,
                "logits_unlab": unlab, "proj_feats_unlab": proj}
    B = views.shape[0]
    x3d = views.reshape(B, -1)[None]
    feats, lab, unlab, proj = _forward_views(x3d, kp, dims, compute_dtype, vmem_limit_bytes)
    return {"feats": feats[0], "logits_lab": lab[0],
            "logits_unlab": unlab[0], "proj_feats_unlab": proj[0]}


# ---------------------------------------------------------------------------
# Deterministic synthetic parameters (shapes follow Net.__init__)
# ---------------------------------------------------------------------------
def make_params(key, *, in_dim, feat_dim, hidden_dim, proj_dim,
                num_labeled, num_unlabeled, num_heads):
    ks = jax.random.split(key, 6)
    scale = 0.05
    return {
        "w_enc": scale * jax.random.normal(ks[0], (feat_dim, in_dim), jnp.float32),
        "w_lab": scale * jax.random.normal(ks[1], (num_labeled, feat_dim), jnp.float32),
        "w1": scale * jax.random.normal(ks[2], (num_heads, hidden_dim, feat_dim), jnp.float32),
        "b1": jnp.zeros((num_heads, hidden_dim), jnp.float32),
        "g1": jnp.ones((num_heads, hidden_dim), jnp.float32),     # BN weight init = 1
        "be1": jnp.zeros((num_heads, hidden_dim), jnp.float32),   # BN bias init = 0
        "w2": scale * jax.random.normal(ks[3], (num_heads, proj_dim, hidden_dim), jnp.float32),
        "b2": scale * jax.random.normal(ks[4], (num_heads, proj_dim), jnp.float32),
        "wp": scale * jax.random.normal(ks[5], (num_heads, num_unlabeled, proj_dim), jnp.float32),
    }


# Pure-JAX reference (torch semantics) for correctness checking.
def _reference_single(x, params):
    def l2n(t):
        n = jnp.sqrt(jnp.sum(t * t, axis=-1, keepdims=True))
        return t / jnp.maximum(n, EPS_NORM)

    feats = x @ params["w_enc"].T
    logits_lab = l2n(feats) @ params["w_lab"].T
    logits, projs = [], []
    for h in range(params["w1"].shape[0]):
        z = feats @ params["w1"][h].T + params["b1"][h][None, :]
        m = jnp.mean(z, axis=0, keepdims=True)
        v = jnp.mean((z - m) ** 2, axis=0, keepdims=True)
        z = (z - m) / jnp.sqrt(v + EPS_BN) * params["g1"][h][None, :] + params["be1"][h][None, :]
        z = jnp.maximum(z, 0.0)
        z = z @ params["w2"][h].T + params["b2"][h][None, :]
        zn = l2n(z)
        projs.append(zn)
        logits.append(zn @ params["wp"][h].T)
    return feats, logits_lab, jnp.stack(logits), jnp.stack(projs)


if __name__ == "__main__":
    # Small shapes consistent with the module (feat/hidden/proj scaled down).
    B, IN_DIM = 8, 32
    FEAT_DIM, HIDDEN_DIM, PROJ_DIM = 64, 128, 32
    NUM_LABELED, NUM_UNLABELED, NUM_HEADS = 16, 24, 5
    NUM_VIEWS = 2

    key = jax.random.PRNGKey(0)
    kx, kparam = jax.random.split(key)
    views = list(jax.random.normal(kx, (NUM_VIEWS, B, IN_DIM), jnp.float32))
    params = make_params(
        kparam, in_dim=IN_DIM, feat_dim=FEAT_DIM, hidden_dim=HIDDEN_DIM,
        proj_dim=PROJ_DIM, num_labeled=NUM_LABELED,
        num_unlabeled=NUM_UNLABELED, num_heads=NUM_HEADS,
    )
    prepared = prepare_params(params)   # compute_dtype=f32 (torch numerics)

    def maxdiff(a, b):
        return float(jnp.max(jnp.abs(a - b)))

    # --- single-view path ---
    out1 = net_forward(views[0], prepared)
    jax.block_until_ready(out1)
    assert out1["feats"].shape == (B, FEAT_DIM)
    assert out1["logits_lab"].shape == (B, NUM_LABELED)
    assert out1["logits_unlab"].shape == (NUM_HEADS, B, NUM_UNLABELED)
    assert out1["proj_feats_unlab"].shape == (NUM_HEADS, B, PROJ_DIM)
    rf, rl, ru, rp = _reference_single(views[0], params)
    assert maxdiff(out1["feats"], rf) < 5e-3
    assert maxdiff(out1["logits_lab"], rl) < 5e-3
    assert maxdiff(out1["logits_unlab"], ru) < 5e-3
    assert maxdiff(out1["proj_feats_unlab"], rp) < 5e-3

    # --- list-of-views path (one kernel call, per-view BN statistics) ---
    out2 = net_forward(views, prepared)
    jax.block_until_ready(out2)
    assert out2["feats"].shape == (NUM_VIEWS, B, FEAT_DIM)
    assert out2["logits_lab"].shape == (NUM_VIEWS, B, NUM_LABELED)
    assert out2["logits_unlab"].shape == (NUM_VIEWS, NUM_HEADS, B, NUM_UNLABELED)
    assert out2["proj_feats_unlab"].shape == (NUM_VIEWS, NUM_HEADS, B, PROJ_DIM)
    refs = [_reference_single(v, params) for v in views]
    assert maxdiff(out2["feats"], jnp.stack([r[0] for r in refs])) < 5e-3
    assert maxdiff(out2["logits_lab"], jnp.stack([r[1] for r in refs])) < 5e-3
    assert maxdiff(out2["logits_unlab"], jnp.stack([r[2] for r in refs])) < 5e-3
    assert maxdiff(out2["proj_feats_unlab"], jnp.stack([r[3] for r in refs])) < 5e-3
    norms = jnp.linalg.norm(out2["proj_feats_unlab"], axis=-1)
    assert bool(jnp.all(jnp.abs(norms - 1.0) < 1e-4))

    print("KERNEL_OK")
</pallas_src>

<mosaic_0001>
module attributes {stable_mosaic.version = 11 : i64} {
  func.func @fused_net_kernel(%arg0: i32, %arg1: i32, %arg2: memref<1x8x32xf32, #tpu.memory_space<vmem>>, %arg3: memref<32x128xf32, #tpu.memory_space<vmem>>, %arg4: memref<128x128xf32, #tpu.memory_space<vmem>>, %arg5: memref<1x128x128xf32, #tpu.memory_space<vmem>>, %arg6: memref<1x3x128xf32, #tpu.memory_space<vmem>>, %arg7: memref<1x128x128xf32, #tpu.memory_space<vmem>>, %arg8: memref<1x1x128xf32, #tpu.memory_space<vmem>>, %arg9: memref<1x128x128xf32, #tpu.memory_space<vmem>>, %arg10: memref<1x8x128xf32, #tpu.memory_space<vmem>>, %arg11: memref<1x8x128xf32, #tpu.memory_space<vmem>>, %arg12: memref<1x1x8x128xf32, #tpu.memory_space<vmem>>, %arg13: memref<1x1x8x128xf32, #tpu.memory_space<vmem>>, %arg14: memref<8x128xf32, #tpu.memory_space<vmem>>) attributes {dimension_semantics = [#tpu.dimension_semantics<parallel>, #tpu.dimension_semantics<arbitrary>], iteration_bounds = array<i64: 1, 5>, scalar_prefetch = 0 : i64, scratch_operands = 1 : i64, tpu.core_type = #tpu.core_type<tc>, window_params = [{transform_indices = @transform_0, window_bounds = array<i64: 1, 8, 32>}, {pipeline_mode = #tpu.pipeline_mode<synchronous>, transform_indices = @transform_1, window_bounds = array<i64: 32, 128>}, {pipeline_mode = #tpu.pipeline_mode<synchronous>, transform_indices = @transform_2, window_bounds = array<i64: 128, 128>}, {transform_indices = @transform_3, window_bounds = array<i64: 1, 128, 128>}, {transform_indices = @transform_4, window_bounds = array<i64: 1, 3, 128>}, {transform_indices = @transform_5, window_bounds = array<i64: 1, 128, 128>}, {transform_indices = @transform_6, window_bounds = array<i64: 1, 1, 128>}, {transform_indices = @transform_7, window_bounds = array<i64: 1, 128, 128>}, {transform_indices = @transform_8, window_bounds = array<i64: 1, 8, 128>}, {transform_indices = @transform_9, window_bounds = array<i64: 1, 8, 128>}, {transform_indices = @transform_10, window_bounds = array<i64: 1, 1, 8, 128>}, {transform_indices = @transform_11, window_bounds = array<i64: 1, 1, 8, 128>}]} {
    %c0_i32 = arith.constant 0 : i32
    %0 = arith.cmpi eq, %arg1, %c0_i32 : i32
    %1 = arith.extui %0 : i1 to i32
    %c0_i32_0 = arith.constant 0 : i32
    %2 = arith.cmpi ne, %1, %c0_i32_0 : i32
    scf.if %2 {
      %c0_35 = arith.constant 0 : index
      %c0_36 = arith.constant 0 : index
      %c0_37 = arith.constant 0 : index
      %64 = vector.load %arg2[%c0_35, %c0_36, %c0_37] : memref<1x8x32xf32, #tpu.memory_space<vmem>>, vector<1x8x32xf32>
      %65 = vector.shape_cast %64 : vector<1x8x32xf32> to vector<8x32xf32>
      %c0_38 = arith.constant 0 : index
      %c0_39 = arith.constant 0 : index
      %66 = vector.load %arg3[%c0_38, %c0_39] : memref<32x128xf32, #tpu.memory_space<vmem>>, vector<32x128xf32>
      %cst_40 = arith.constant dense<0.000000e+00> : vector<8x128xf32>
      %67 = tpu.matmul %65, %66, %cst_40 {dimension_numbers = #tpu.dot_dimension_numbers<[1], [0], [0], [1], [0, 0, 1, 1], [], []>} : vector<8x32xf32>, vector<32x128xf32>, vector<8x128xf32> -> vector<8x128xf32>
      %c0_41 = arith.constant 0 : index
      %c0_42 = arith.constant 0 : index
      %68 = vector.load %arg14[%c0_41, %c0_42] : memref<8x128xf32, #tpu.memory_space<vmem>>, vector<8x128xf32>
      tpu.vector_store %arg14[%c0_41, %c0_42], %67 {strides = array<i32>} : memref<8x128xf32, #tpu.memory_space<vmem>>, vector<8x128xf32>,
      %c0_43 = arith.constant 0 : index
      %c0_44 = arith.constant 0 : index
      %c0_45 = arith.constant 0 : index
      %69 = vector.load %arg10[%c0_43, %c0_44, %c0_45] : memref<1x8x128xf32, #tpu.memory_space<vmem>>, vector<1x8x128xf32>
      %70 = vector.shape_cast %69 : vector<1x8x128xf32> to vector<8x128xf32>
      %71 = vector.shape_cast %67 : vector<8x128xf32> to vector<1x8x128xf32>
      tpu.vector_store %arg10[%c0_43, %c0_44, %c0_45], %71 {strides = array<i32>} : memref<1x8x128xf32, #tpu.memory_space<vmem>>, vector<1x8x128xf32>,
      %72 = arith.mulf %67, %67 : vector<8x128xf32>
      %cst_46 = arith.constant dense<0.000000e+00> : vector<8xf32>
      %73 = vector.multi_reduction <add>, %72, %cst_46 [1] : vector<8x128xf32> to vector<8xf32>
      %74 = vector.shape_cast %73 : vector<8xf32> to vector<8x1xf32>
      %cst_47 = arith.constant 1.000000e-24 : f32
      %75 = vector.broadcast %cst_47 : f32 to vector<8x1xf32>
      %76 = arith.maximumf %74, %75 : vector<8x1xf32>
      %77 = math.rsqrt %76 : vector<8x1xf32>
      %78 = vector.broadcast %77 : vector<8x1xf32> to vector<8x128xf32>
      %79 = arith.mulf %67, %78 : vector<8x128xf32>
      %c0_48 = arith.constant 0 : index
      %c0_49 = arith.constant 0 : index
      %80 = vector.load %arg4[%c0_48, %c0_49] : memref<128x128xf32, #tpu.memory_space<vmem>>, vector<128x128xf32>
      %cst_50 = arith.constant dense<0.000000e+00> : vector<8x128xf32>
      %81 = tpu.matmul %79, %80, %cst_50 {dimension_numbers = #tpu.dot_dimension_numbers<[1], [0], [0], [1], [0, 0, 1, 1], [], []>} : vector<8x128xf32>, vector<128x128xf32>, vector<8x128xf32> -> vector<8x128xf32>
      %c0_51 = arith.constant 0 : index
      %c0_52 = arith.constant 0 : index
      %c0_53 = arith.constant 0 : index
      %82 = vector.load %arg11[%c0_51, %c0_52, %c0_53] : memref<1x8x128xf32, #tpu.memory_space<vmem>>, vector<1x8x128xf32>
      %83 = vector.shape_cast %82 : vector<1x8x128xf32> to vector<8x128xf32>
      %84 = vector.shape_cast %81 : vector<8x128xf32> to vector<1x8x128xf32>
      tpu.vector_store %arg11[%c0_51, %c0_52, %c0_53], %84 {strides = array<i32>} : memref<1x8x128xf32, #tpu.memory_space<vmem>>, vector<1x8x128xf32>,
    } else {
    }
    %c0 = arith.constant 0 : index
    %c0_1 = arith.constant 0 : index
    %3 = vector.load %arg14[%c0, %c0_1] : memref<8x128xf32, #tpu.memory_space<vmem>>, vector<8x128xf32>
    %c0_2 = arith.constant 0 : index
    %c0_3 = arith.constant 0 : index
    %c0_4 = arith.constant 0 : index
    %4 = vector.load %arg6[%c0_2, %c0_3, %c0_4] : memref<1x3x128xf32, #tpu.memory_space<vmem>>, vector<1x3x128xf32>
    %5 = vector.shape_cast %4 : vector<1x3x128xf32> to vector<3x128xf32>
    %c0_5 = arith.constant 0 : index
    %c0_6 = arith.constant 0 : index
    %c0_7 = arith.constant 0 : index
    %6 = vector.load %arg5[%c0_5, %c0_6, %c0_7] : memref<1x128x128xf32, #tpu.memory_space<vmem>>, vector<1x128x128xf32>
    %7 = vector.shape_cast %6 : vector<1x128x128xf32> to vector<128x128xf32>
    %cst = arith.constant dense<0.000000e+00> : vector<8x128xf32>
    %8 = tpu.matmul %3, %7, %cst {dimension_numbers = #tpu.dot_dimension_numbers<[1], [0], [0], [1], [0, 0, 1, 1], [], []>} : vector<8x128xf32>, vector<128x128xf32>, vector<8x128xf32> -> vector<8x128xf32>
    %9 = vector.extract_strided_slice %5 {offsets = [0, 0], sizes = [1, 128], strides = [1, 1]} : vector<3x128xf32> to vector<1x128xf32>
    %10 = vector.broadcast %9 : vector<1x128xf32> to vector<8x128xf32>
    %11 = arith.addf %8, %10 : vector<8x128xf32>
    %cst_8 = arith.constant dense<0.000000e+00> : vector<128xf32>
    %12 = vector.multi_reduction <add>, %11, %cst_8 [0] : vector<8x128xf32> to vector<128xf32>
    %13 = vector.shape_cast %12 : vector<128xf32> to vector<1x128xf32>
    %cst_9 = arith.constant 8.000000e+00 : f32
    %14 = vector.broadcast %cst_9 : f32 to vector<1x128xf32>
    %15 = arith.divf %13, %14 : vector<1x128xf32>
    %16 = vector.broadcast %15 : vector<1x128xf32> to vector<8x128xf32>
    %17 = arith.subf %11, %16 : vector<8x128xf32>
    %18 = vector.broadcast %15 : vector<1x128xf32> to vector<8x128xf32>
    %19 = arith.subf %11, %18 : vector<8x128xf32>
    %20 = arith.mulf %17, %19 : vector<8x128xf32>
    %cst_10 = arith.constant dense<0.000000e+00> : vector<128xf32>
    %21 = vector.multi_reduction <add>, %20, %cst_10 [0] : vector<8x128xf32> to vector<128xf32>
    %22 = vector.shape_cast %21 : vector<128xf32> to vector<1x128xf32>
    %cst_11 = arith.constant 8.000000e+00 : f32
    %23 = vector.broadcast %cst_11 : f32 to vector<1x128xf32>
    %24 = arith.divf %22, %23 : vector<1x128xf32>
    %25 = vector.broadcast %15 : vector<1x128xf32> to vector<8x128xf32>
    %26 = arith.subf %11, %25 : vector<8x128xf32>
    %cst_12 = arith.constant 9.99999974E-6 : f32
    %27 = vector.broadcast %cst_12 : f32 to vector<1x128xf32>
    %28 = arith.addf %24, %27 : vector<1x128xf32>
    %29 = math.rsqrt %28 : vector<1x128xf32>
    %30 = vector.broadcast %29 : vector<1x128xf32> to vector<8x128xf32>
    %31 = arith.mulf %26, %30 : vector<8x128xf32>
    %32 = vector.extract_strided_slice %5 {offsets = [1, 0], sizes = [1, 128], strides = [1, 1]} : vector<3x128xf32> to vector<1x128xf32>
    %33 = vector.broadcast %32 : vector<1x128xf32> to vector<8x128xf32>
    %34 = arith.mulf %31, %33 : vector<8x128xf32>
    %35 = vector.extract_strided_slice %5 {offsets = [2, 0], sizes = [1, 128], strides = [1, 1]} : vector<3x128xf32> to vector<1x128xf32>
    %36 = vector.broadcast %35 : vector<1x128xf32> to vector<8x128xf32>
    %37 = arith.addf %34, %36 : vector<8x128xf32>
    %cst_13 = arith.constant 0.000000e+00 : f32
    %38 = vector.broadcast %cst_13 : f32 to vector<8x128xf32>
    %39 = arith.maximumf %37, %38 : vector<8x128xf32>
    %c0_14 = arith.constant 0 : index
    %c0_15 = arith.constant 0 : index
    %c0_16 = arith.constant 0 : index
    %40 = vector.load %arg7[%c0_14, %c0_15, %c0_16] : memref<1x128x128xf32, #tpu.memory_space<vmem>>, vector<1x128x128xf32>
    %41 = vector.shape_cast %40 : vector<1x128x128xf32> to vector<128x128xf32>
    %cst_17 = arith.constant dense<0.000000e+00> : vector<8x128xf32>
    %42 = tpu.matmul %39, %41, %cst_17 {dimension_numbers = #tpu.dot_dimension_numbers<[1], [0], [0], [1], [0, 0, 1, 1], [], []>} : vector<8x128xf32>, vector<128x128xf32>, vector<8x128xf32> -> vector<8x128xf32>
    %c0_18 = arith.constant 0 : index
    %c0_19 = arith.constant 0 : index
    %c0_20 = arith.constant 0 : index
    %43 = vector.load %arg8[%c0_18, %c0_19, %c0_20] : memref<1x1x128xf32, #tpu.memory_space<vmem>>, vector<1x1x128xf32>
    %44 = vector.shape_cast %43 : vector<1x1x128xf32> to vector<1x128xf32>
    %45 = vector.broadcast %44 : vector<1x128xf32> to vector<8x128xf32>
    %46 = arith.addf %42, %45 : vector<8x128xf32>
    %47 = arith.mulf %46, %46 : vector<8x128xf32>
    %cst_21 = arith.constant dense<0.000000e+00> : vector<8xf32>
    %48 = vector.multi_reduction <add>, %47, %cst_21 [1] : vector<8x128xf32> to vector<8xf32>
    %49 = vector.shape_cast %48 : vector<8xf32> to vector<8x1xf32>
    %cst_22 = arith.constant 1.000000e-24 : f32
    %50 = vector.broadcast %cst_22 : f32 to vector<8x1xf32>
    %51 = arith.maximumf %49, %50 : vector<8x1xf32>
    %52 = math.rsqrt %51 : vector<8x1xf32>
    %53 = vector.broadcast %52 : vector<8x1xf32> to vector<8x128xf32>
    %54 = arith.mulf %46, %53 : vector<8x128xf32>
    %c0_23 = arith.constant 0 : index
    %c0_24 = arith.constant 0 : index
    %c0_25 = arith.constant 0 : index
    %c0_26 = arith.constant 0 : index
    %55 = vector.load %arg13[%c0_23, %c0_24, %c0_25, %c0_26] : memref<1x1x8x128xf32, #tpu.memory_space<vmem>>, vector<1x1x8x128xf32>
    %56 = vector.shape_cast %55 : vector<1x1x8x128xf32> to vector<8x128xf32>
    %57 = vector.shape_cast %54 : vector<8x128xf32> to vector<1x1x8x128xf32>
    tpu.vector_store %arg13[%c0_23, %c0_24, %c0_25, %c0_26], %57 {strides = array<i32>} : memref<1x1x8x128xf32, #tpu.memory_space<vmem>>, vector<1x1x8x128xf32>,
    %c0_27 = arith.constant 0 : index
    %c0_28 = arith.constant 0 : index
    %c0_29 = arith.constant 0 : index
    %58 = vector.load %arg9[%c0_27, %c0_28, %c0_29] : memref<1x128x128xf32, #tpu.memory_space<vmem>>, vector<1x128x128xf32>
    %59 = vector.shape_cast %58 : vector<1x128x128xf32> to vector<128x128xf32>
    %cst_30 = arith.constant dense<0.000000e+00> : vector<8x128xf32>
    %60 = tpu.matmul %54, %59, %cst_30 {dimension_numbers = #tpu.dot_dimension_numbers<[1], [0], [0], [1], [0, 0, 1, 1], [], []>} : vector<8x128xf32>, vector<128x128xf32>, vector<8x128xf32> -> vector<8x128xf32>
    %c0_31 = arith.constant 0 : index
    %c0_32 = arith.constant 0 : index
    %c0_33 = arith.constant 0 : index
    %c0_34 = arith.constant 0 : index
    %61 = vector.load %arg12[%c0_31, %c0_32, %c0_33, %c0_34] : memref<1x1x8x128xf32, #tpu.memory_space<vmem>>, vector<1x1x8x128xf32>
    %62 = vector.shape_cast %61 : vector<1x1x8x128xf32> to vector<8x128xf32>
    %63 = vector.shape_cast %60 : vector<8x128xf32> to vector<1x1x8x128xf32>
    tpu.vector_store %arg12[%c0_31, %c0_32, %c0_33, %c0_34], %63 {strides = array<i32>} : memref<1x1x8x128xf32, #tpu.memory_space<vmem>>, vector<1x1x8x128xf32>,
    return
  }
  func.func @transform_0(%arg0: i32, %arg1: i32) -> (i32, i32, i32) {
    %c0_i32 = arith.constant 0 : i32
    %c0_i32_0 = arith.constant 0 : i32
    %c0_i32_1 = arith.constant 0 : i32
    return %arg0, %c0_i32, %c0_i32_0 : i32, i32, i32
  }
  func.func @transform_1(%arg0: i32, %arg1: i32) -> (i32, i32) {
    %c0_i32 = arith.constant 0 : i32
    %c0_i32_0 = arith.constant 0 : i32
    %c0_i32_1 = arith.constant 0 : i32
    return %c0_i32, %c0_i32_0 : i32, i32
  }
  func.func @transform_2(%arg0: i32, %arg1: i32) -> (i32, i32) {
    %c0_i32 = arith.constant 0 : i32
    %c0_i32_0 = arith.constant 0 : i32
    %c0_i32_1 = arith.constant 0 : i32
    return %c0_i32, %c0_i32_0 : i32, i32
  }
  func.func @transform_3(%arg0: i32, %arg1: i32) -> (i32, i32, i32) {
    %c0_i32 = arith.constant 0 : i32
    %c0_i32_0 = arith.constant 0 : i32
    %c0_i32_1 = arith.constant 0 : i32
    return %arg1, %c0_i32, %c0_i32_0 : i32, i32, i32
  }
  func.func @transform_4(%arg0: i32, %arg1: i32) -> (i32, i32, i32) {
    %c0_i32 = arith.constant 0 : i32
    %c0_i32_0 = arith.constant 0 : i32
    %c0_i32_1 = arith.constant 0 : i32
    return %arg1, %c0_i32, %c0_i32_0 : i32, i32, i32
  }
  func.func @transform_5(%arg0: i32, %arg1: i32) -> (i32, i32, i32) {
    %c0_i32 = arith.constant 0 : i32
    %c0_i32_0 = arith.constant 0 : i32
    %c0_i32_1 = arith.constant 0 : i32
    return %arg1, %c0_i32, %c0_i32_0 : i32, i32, i32
  }
  func.func @transform_6(%arg0: i32, %arg1: i32) -> (i32, i32, i32) {
    %c0_i32 = arith.constant 0 : i32
    %c0_i32_0 = arith.constant 0 : i32
    %c0_i32_1 = arith.constant 0 : i32
    return %arg1, %c0_i32, %c0_i32_0 : i32, i32, i32
  }
  func.func @transform_7(%arg0: i32, %arg1: i32) -> (i32, i32, i32) {
    %c0_i32 = arith.constant 0 : i32
    %c0_i32_0 = arith.constant 0 : i32
    %c0_i32_1 = arith.constant 0 : i32
    return %arg1, %c0_i32, %c0_i32_0 : i32, i32, i32
  }
  func.func @transform_8(%arg0: i32, %arg1: i32) -> (i32, i32, i32) {
    %c0_i32 = arith.constant 0 : i32
    %c0_i32_0 = arith.constant 0 : i32
    %c0_i32_1 = arith.constant 0 : i32
    return %arg0, %c0_i32, %c0_i32_0 : i32, i32, i32
  }
  func.func @transform_9(%arg0: i32, %arg1: i32) -> (i32, i32, i32) {
    %c0_i32 = arith.constant 0 : i32
    %c0_i32_0 = arith.constant 0 : i32
    %c0_i32_1 = arith.constant 0 : i32
    return %arg0, %c0_i32, %c0_i32_0 : i32, i32, i32
  }
  func.func @transform_10(%arg0: i32, %arg1: i32) -> (i32, i32, i32, i32) {
    %c0_i32 = arith.constant 0 : i32
    %c0_i32_0 = arith.constant 0 : i32
    %c0_i32_1 = arith.constant 0 : i32
    return %arg0, %arg1, %c0_i32, %c0_i32_0 : i32, i32, i32, i32
  }
  func.func @transform_11(%arg0: i32, %arg1: i32) -> (i32, i32, i32, i32) {
    %c0_i32 = arith.constant 0 : i32
    %c0_i32_0 = arith.constant 0 : i32
    %c0_i32_1 = arith.constant 0 : i32
    return %arg0, %arg1, %c0_i32, %c0_i32_0 : i32, i32, i32, i32
  }
}

</mosaic_0001>

<bundles_post_ra>
// kernel: tpu_custom_call.1
= control target key start
LH: loop header
LB: loop body
LE: loop exit
PB: predicated region body
PF: predicated region fallthrough
CT: control target
= control target key end

     0   :  { %s2190_s0 = inlined_call_operand.hbm [shape: f32[1,8,32], index: 0, kind: input, shape index: {}]   ;;  %s2191_s1 = inlined_call_operand.hbm [shape: f32[32,128], index: 1, kind: input, shape index: {}]   ;;  %s2192_s2 = inlined_call_operand.hbm [shape: f32[128,128], index: 2, kind: input, shape index: {}]   ;;  %s2193_s3 = inlined_call_operand.hbm [shape: f32[5,128,128], index: 3, kind: input, shape index: {}]   ;;  %s2194_s4 = inlined_call_operand.hbm [shape: f32[5,3,128], index: 4, kind: input, shape index: {}]   ;;  %s2195_s5 = inlined_call_operand.hbm [shape: f32[5,128,128], index: 5, kind: input, shape index: {}]   ;;  %s2196_s6 = inlined_call_operand.vmem [shape: f32[5,1,128], index: 6, kind: input, shape index: {}]   ;;  %s2197_s7 = inlined_call_operand.hbm [shape: f32[5,128,128], index: 7, kind: input, shape index: {}]   ;;  %s2198_s8 = inlined_call_operand.hbm [shape: f32[1,8,128], index: 8, kind: output, shape index: {0}]   ;;  %s2199_s9 = inlined_call_operand.hbm [shape: f32[1,8,128], index: 9, kind: output, shape index: {1}]   ;;  %s2200_s10 = inlined_call_operand.hbm [shape: f32[1,5,8,128], index: 10, kind: output, shape index: {2}]   ;;  %s2201_s11 = inlined_call_operand.hbm [shape: f32[1,5,8,128], index: 11, kind: output, shape index: {3}]  }
   0x1   :  { %2218 = sst [smem:[#allocation34_spill]] %s2190_s0 }
   0x2   :  { %2219 = sst [smem:[#allocation35_spill]] %s2191_s1 }
   0x3   :  { %2220 = sst [smem:[#allocation36_spill]] %s2192_s2 }
   0x4   :  { %2221 = sst [smem:[#allocation37_spill]] %s2193_s3 }
   0x5   :  { %2222 = sst [smem:[#allocation38_spill]] %s2195_s5 }
   0x6   :  { %2223 = sst [smem:[#allocation39_spill]] %s2198_s8 }
   0x7   :  { %2224 = sst [smem:[#allocation40_spill]] %s2199_s9 }
   0x8   :  { %2225 = sst [smem:[#allocation41_spill]] %s2200_s10 }
   0x9   :  { %2226 = sst [smem:[#allocation42_spill]] %s2201_s11 }
   0xa   :  { %17 = vsyncpa [#allocation4], 0 }
   0xb   :  { %18 = vsyncpa [#allocation7], 0 }
   0xc   :  { %19 = vsyncpa [#allocation10], 0 }
   0xd   :  { %21 = vsyncpa [#allocation10 + $0x1], 0 }
   0xe   :  { %22 = vsyncpa [#allocation13], 0 }
   0xf   :  { %24 = vsyncpa [#allocation13 + $0x1], 0 }
  0x10   :  { %25 = vsyncpa [#allocation5], 0 }
  0x11   :  { %26 = vsyncpa [#allocation17], 0  ;;  %s1838_s17 = smov 0   ;;  %s1840_s18 = smov 0  }
  0x12   :  { %s1842_s19 = smov 0   ;;  %s1844_s20 = smov 0  }
  0x13   :  { %s1846_s21 = smov 0   ;;  %s1848_s22 = smov 0  }
  0x14 LB: > { %2227 = sst [smem:[#allocation27_spill]] %s1756_s19  ;;  %s1867_s23 = sadd.s32 4294967295, %s1768_s22   ;;  %s1768_s22 = sphi %s1848_s22, %s32_s22   ;;  %s1764_s21 = sphi %s1846_s21, %s2260_s21   ;;  %s1760_s20 = sphi %s1844_s20, %s2259_s20   ;;  %s1756_s19 = sphi %s1842_s19, %s2258_s19   ;;  %s1752_s18 = sphi %s1840_s18, %s2262_s18   ;;  %s1748_s17 = sphi %s1838_s17, %s2261_s17  }
  0x15   : > { %2228 = sst [smem:[#allocation28_spill]] %s1764_s21  ;;  %s2202_s24 = sadd.s32 4294967294, %s1768_s22  }
  0x16   : > { %2229 = sst [smem:[#allocation29_spill]] %s1768_s22  ;;  %p132_p0 = scmp.ne.s32.totalorder %s1752_s18, %s1748_s17 }
  0x17   : > { %p133_p1 = scmp.eq.s32.totalorder %s1867_s23, 0  ;;  %p314_p2 = scmp.eq.s32.totalorder %s1867_s23, 4 }
  0x18   : > { %p320_p3 = scmp.eq.s32.totalorder %s2202_s24, 4  ;;  %p1192_p5 = scmp.ge.s32.totalorder %s1768_s22, 1 }
  0x19   : > { %p1877_p4 = por %p133_p1, %p132_p0  ;;  %p355_p7 = scmp.lt.s32.totalorder %s1768_s22, 6 }
  0x1a   : > { %p1882_p6 = por %p320_p3, %p132_p0  ;;  %s2233_s1 = sld [smem:[#allocation35_spill]] }
  0x1b   : > { %p1890_p8 = pnand %p1192_p5, %p355_p7  ;;  %s1770_s12 = smov [#allocation6]  }
  0x1c   : > { %s2231_s26 = scalar_select %p1882_p6, 1, 0 }
  0x1d   : > { %p1265_p9 = pneg %p1890_p8  ;;  %s382_s13 = sshll.u32 %s1770_s12, 4  ;;  %s383_s13 = int_to_ptr.vmem [resolvable:$true] %s382_s13 }
  0x1e   : > { %2232 = sst [smem:[#allocation30_spill]] %s2231_s26  ;;  %s2203_s15 = smov 128  }
  0x1f   : > { %p1898_p10 = pnand %p1265_p9, %p133_p1  ;;  %s2205_s16 = smov 8  }
  0x20   : > { %s380_s29 = sshll.u32 %s2233_s1, 4  ;;  %s41_s17 = sadd.s32 1, %s1764_s21  ;;  %s381_s29 = int_to_ptr.hbm [resolvable:$true] %s380_s29 }
  0x21   : > { %1271 = dma.hbm_to_vmem [thread:$0]  (!%p1898_p10), %s381_s29, 512, %s383_s13, [#allocation7], %s2203_s15, %s2203_s15, %s2205_s16  }
  0x22   : > { %p42_p11 = scmp.ge.s32.totalorder %s41_s17, 5  ;;  %s119_s27 = sadd.s32 1, %s1756_s19 }
  0x23   : > { %p126_p12 = scmp.ne.s32.totalorder %s1756_s19, %s1752_s18  ;;  %p127_p13 = scmp.eq.s32.totalorder %s1768_s22, 0 }
  0x24   : > { %s2264_s17 = smov (%p42_p11, %s41_s17), 0  ;;  %p1298_p5 = scmp.lt.s32.totalorder %s1768_s22, 5 }
  0x25   : > { %2236 = sst [smem:[#allocation31_spill]] %s2264_s17  ;;  %p1914_p0 = por %p127_p13, %p126_p12 }
  0x26   : > { %p1920_p3 = por %p314_p2, %p126_p12  ;;  %s116_s29 = ssub.s32 %s1764_s21, %s2264_s17 }
  0x27   : > { %p117_p7 = scmp.eq.s32.totalorder %s116_s29, 0  ;;  %s410_s13 = sand.u32 1, %s1768_s22  }
  0x28   : > { %s2238_s12 = scalar_select %p1920_p3, 1, 0 }
  0x29   : > { %s2213_s24 = sand.u32 1, %s1756_s19   ;;  %s1937_s1 = sshll.u32 %s1764_s21, 7 }
  0x2a   : > { %2239 = sst [smem:[#allocation32_spill]] %s2238_s12  ;;  %s1934_s16 = sshll.u32 %s2213_s24, 7 }
  0x2b   : > { %s1930_s15 = scalar_select %p117_p7, %s1756_s19, %s119_s27  }
  0x2c   : > { %s2241_s3 = sld [smem:[#allocation37_spill]]  ;;  %s414_s10 = scalar_lea.vmem [#allocation9], %s1934_s16 }
  0x2d   : > { %2240 = sst [smem:[#allocation33_spill]] %s1930_s15  ;;  %s422_s29 = sshll.u32 %s414_s10, 4  ;;  %s423_s29 = int_to_ptr.vmem [resolvable:$true] %s422_s29 }
  0x2e   : > { %p1948_p9 = pnand %p1298_p5, %p1914_p0  ;;  %s2243_s5 = sld [smem:[#allocation38_spill]] }
  0x2f   : > { %s1956_s26 = scalar_lea.sflag [#allocation10], %s410_s13  ;;  %s2244_s10 = smov 8  }
  0x30   : > { %s455_s28 = scalar_lea.vmem [#allocation12], %s1934_s16  ;;  %s1965_s24 = scalar_lea.sflag [#allocation13], %s410_s13 }
  0x31   : > { %s2246_s0 = sld [smem:[#allocation34_spill]]  ;;  %s1201_s15 = sshll.u32 %s1764_s21, 2 }
  0x32   : > { %s419_s12 = scalar_lea.hbm %s2241_s3, %s1937_s1  ;;  %s463_s3 = sshll.u32 %s455_s28, 4  ;;  %s464_s3 = int_to_ptr.vmem [resolvable:$true] %s463_s3 }
  0x33   : > { %s420_s17 = sshll.u32 %s419_s12, 4  ;;  %s2245_s12 = smov 128   ;;  %s421_s17 = int_to_ptr.hbm [resolvable:$true] %s420_s17 }
  0x34   : > { %s460_s9 = scalar_lea.hbm %s2243_s5, %s1937_s1  ;;  %s2247_s2 = sld [smem:[#allocation36_spill]] }
  0x35   : > { %s461_s11 = sshll.u32 %s460_s9, 4  ;;  %s440_s28 = scalar_lea.hbm %s2194_s4, %s1201_s15  ;;  %s462_s11 = int_to_ptr.hbm [resolvable:$true] %s461_s11 }
  0x36   : > { %1278 = dma.hbm_to_vmem [thread:$0]  (!%p1948_p9), %s421_s17, 2048, %s423_s29, %s1956_s26, %s2245_s12, %s2245_s12, %s2244_s10  }
  0x37   : > { %1284 = dma.hbm_to_vmem [thread:$0]  (!%p1948_p9), %s462_s11, 2048, %s464_s3, %s1965_s24, %s2245_s12, %s2245_s12, %s2244_s10  }
  0x38   : > { %s369_s5 = sshll.u32 %s2246_s0, 4  ;;  %s1773_s17 = smov [#allocation3]   ;;  %s370_s5 = int_to_ptr.hbm [resolvable:$true] %s369_s5 }
  0x39   : > { %s371_s29 = sshll.u32 %s1773_s17, 4  ;;  %s2248_s3 = sand.u32 1, %s1756_s19   ;;  %s372_s29 = int_to_ptr.vmem [resolvable:$true] %s371_s29 }
  0x3a   : > { %s394_s8 = sshll.u32 %s2247_s2, 4  ;;  %s1200_s13 = sshll.u32 %s2248_s3, 2  ;;  %s395_s8 = int_to_ptr.hbm [resolvable:$true] %s394_s8 }
  0x3b   : > { %1268 = dma.hbm_to_vmem [thread:$0]  (!%p1898_p10), %s370_s5, 128, %s372_s29, [#allocation4]  }
  0x3c   : > { %s1774_s11 = smov [#allocation8]   ;;  %s436_s0 = scalar_lea.vmem [#allocation11], %s1200_s13 }
  0x3d   : > { %s396_s9 = sshll.u32 %s1774_s11, 4  ;;  %s444_s2 = sshll.u32 %s436_s0, 4  ;;  %s397_s9 = int_to_ptr.vmem [resolvable:$true] %s396_s9  ;;  %s445_s2 = int_to_ptr.vmem [resolvable:$true] %s444_s2 }
  0x3e   : > { %1274 = dma.hbm_to_vmem [thread:$0]  (!%p1898_p10), %s395_s8, 2048, %s397_s9, [#allocation7], %s2245_s12, %s2245_s12, %s2244_s10  }
  0x3f   : > { %s442_s5 = sshll.u32 %s440_s28, 4  ;;  %s488_s11 = scalar_lea.hbm %s2197_s7, %s1937_s1  ;;  %s443_s5 = int_to_ptr.hbm [resolvable:$true] %s442_s5 }
  0x40   : > { %1281 = dma.hbm_to_vmem [thread:$0]  (!%p1948_p9), %s443_s5, 64, %s445_s2, %s1956_s26  }
  0x41   : > { %s483_s14 = scalar_lea.vmem [#allocation14], %s1934_s16  ;;  %s489_s19 = sshll.u32 %s488_s11, 4  ;;  %s490_s19 = int_to_ptr.hbm [resolvable:$true] %s489_s19 }
  0x42   : > { %s491_s21 = sshll.u32 %s483_s14, 4  ;;  %503 = sbr.rel (%p1890_p8) target bundleno = 1131 (0x46b), region = 52  ;;  %s492_s21 = int_to_ptr.vmem [resolvable:$true] %s491_s21 }
  0x43   : > { %1287 = dma.hbm_to_vmem [thread:$0]  (!%p1948_p9), %s490_s19, 2048, %s492_s21, %s1965_s24, %s2245_s12, %s2245_s12, %s2244_s10  }
  0x47   : > { %1719 = dma.done.wait (%p133_p1), [#allocation4], 128  }
  0x48   : > { %1721 = vsyncadd (%p133_p1), [#allocation4], 4294967168 }
  0x49   : > { %1723 = dma.done.wait (%p133_p1), [#allocation7], 2560  }
  0x4a   : > { %1725 = vsyncadd (%p133_p1), [#allocation7], 4294964736  ;;  %s2017_s0 = sand.u32 1, %s1867_s23   ;;  %s522_s1 = sand.u32 1, %s1752_s18  }
  0x4b   : > { %s1212_s2 = sshll.u32 %s522_s1, 7  ;;  %s521_s8 = scalar_lea.sflag [#allocation10], %s2017_s0 }
  0x4c   : > { %s2021_s19 = scalar_lea.vmem [#allocation9], %s1212_s2 }
  0x4d   : > { %1727 = dma.done.wait (%p1877_p4), %s521_s8, 2112  }
  0x4e   : > { %1729 = vsyncadd (%p1877_p4), %s521_s8, 4294965184  ;;  %s1213_s21 = sshll.u32 %s522_s1, 2  ;;  %s541_s16 = scalar_lea.sflag [#allocation13], %s2017_s0 }
  0x4f   : > { %s2027_s30 = scalar_lea.vmem [#allocation11], %s1213_s21  ;;  %s2030_s27 = scalar_lea.vmem [#allocation12], %s1212_s2 }
  0x50   : > { %1731 = dma.done.wait (%p1877_p4), %s541_s16, 4096  }
  0x51   : > { %1733 = vsyncadd (%p1877_p4), %s541_s16, 4294963200  ;;  %s1216_s26 = sshll.u32 %s522_s1, 3  ;;  %p617_p1 = scmp.lt.s32.totalorder %s1760_s20, 4 }
  0x52   : > { %s2044_s9 = scalar_lea.vmem [#allocation14], %s1212_s2  ;;  %s2046_s15 = scalar_lea.vmem [#allocation18], %s1216_s26 }
  0x53   : > { %s2038_s10 = scalar_select %p617_p1, %s1760_s20, 4 }
  0x54   : > { %s2048_s22 = scalar_lea.vmem [#allocation19], %s1216_s26  ;;  %p1218_p8 = scmp.ne.s32.totalorder %s1760_s20, 0 }
  0x55   : > { %s619_s13 = scalar_lea.vmem %s2196_s6, %s2038_s10 }
  0x56   : > { %623 = sbr.rel (%p1218_p8) target bundleno = 492 (0x1ec), region = 84 }
  0x5b   : > { %v628_v0 = vld [vmem:[#allocation6 + $0x18] sm:$0xff]  ;;  %v627_v1 = vld [vmem:[#allocation6 + $0x10] sm:$0xff]  ;;  %v626_v2 = vld [vmem:[#allocation6 + $0x8] sm:$0xff]  ;;  %vm629_vm0 = vcmask 261120  }
  0x5c   : > { %645 = vmatpush.msra.mxu0 %v628_v0  ;;  %v625_v3 = vld [vmem:[#allocation6] sm:$0xff]  ;;  %v624_v4 = vld [vmem:[#allocation3] sm:$0xff]  ;;  %v684_v6 = vld [vmem:[#allocation8 + $0x70] sm:$0xff] }
  0x5d   : > { %v685_v5 = vld [vmem:[#allocation8 + $0x78] sm:$0xff]  ;;  %v683_v7 = vld [vmem:[#allocation8 + $0x68] sm:$0xff]  ;;  %v682_v8 = vld [vmem:[#allocation8 + $0x60] sm:$0xff] }
  0x5e   : > { %646 = vmatpush.msra.mxu0 %v627_v1  ;;  %686 = vmatpush.msra.mxu1 %v685_v5  ;;  %v681_v11 = vld [vmem:[#allocation8 + $0x58] sm:$0xff]  ;;  %v680_v12 = vld [vmem:[#allocation8 + $0x50] sm:$0xff]  ;;  %v679_v13 = vld [vmem:[#allocation8 + $0x48] sm:$0xff] }
  0x5f   : > { %v678_v14 = vld [vmem:[#allocation8 + $0x40] sm:$0xff]  ;;  %v677_v15 = vld [vmem:[#allocation8 + $0x38] sm:$0xff]  ;;  %v676_v16 = vld [vmem:[#allocation8 + $0x30] sm:$0xff] }
  0x60   : > { %647 = vmatpush.msra.mxu0 %v626_v2  ;;  %687 = vmatpush.msra.mxu1 %v684_v6  ;;  %v675_v17 = vld [vmem:[#allocation8 + $0x28] sm:$0xff]  ;;  %v674_v18 = vld [vmem:[#allocation8 + $0x20] sm:$0xff]  ;;  %v673_v19 = vld [vmem:[#allocation8 + $0x18] sm:$0xff] }
  0x61   : > { %v672_v20 = vld [vmem:[#allocation8 + $0x10] sm:$0xff]  ;;  %v671_v21 = vld [vmem:[#allocation8 + $0x8] sm:$0xff]  ;;  %v670_v22 = vld [vmem:[#allocation8] sm:$0xff] }
  0x62   : > { %648 = vmatpush.msra.mxu0 %v625_v3  ;;  %688 = vmatpush.msra.mxu1 %v683_v7 }
  0x63   : > { %1219 = vmatmul.msk.f32.vlgmr.msra.gmra.mxu0 %vm629_vm0, %v624_v4 }
  0x64   : > { %689 = vmatpush.msra.mxu1 %v682_v8 }
  0x66   : > { %690 = vmatpush.msra.mxu1 %v681_v11 }
  0x68   : > { %691 = vmatpush.msra.mxu1 %v680_v12 }
  0x6a   : > { %692 = vmatpush.msra.mxu1 %v679_v13 }
  0x6c   : > { %693 = vmatpush.msra.mxu1 %v678_v14 }
  0x6e   : > { %694 = vmatpush.msra.mxu1 %v677_v15 }
  0x70   : > { %695 = vmatpush.msra.mxu1 %v676_v16 }
  0x72   : > { %696 = vmatpush.msra.mxu1 %v675_v17 }
  0x74   : > { %697 = vmatpush.msra.mxu1 %v674_v18 }
  0x76   : > { %698 = vmatpush.msra.mxu1 %v673_v19 }
  0x78   : > { %699 = vmatpush.msra.mxu1 %v672_v20 }
  0x7a   : > { %700 = vmatpush.msra.mxu1 %v671_v21 }
  0x7c   : > { %701 = vmatpush.msra.mxu1 %v670_v22 }
  0xe0   : > { %v650_v9 = vpop.f32.mrf.mxu0 }
  0xe1   : > { %653 = vst [vmem:[#allocation2] sm:$0xff] %v650_v9  ;;  %v655_v10 = vmul.f32 %v650_v9, %v650_v9 }
  0xe2   : > { %654 = vst [vmem:[#allocation15] sm:$0xff] %v650_v9 }
  0xe3   : > { %656 = vadd.xlane.f32.xlu0 %v655_v10 }
 0x156   : > { %v657_v23 = vpop.xlane.xlu0 %656 }
 0x157   : > { %v658_v24 = vmax.f32 %v657_v23, 1e-24 }
 0x159   : > { %1363 = vrsqrt.f32 %v658_v24  ;;  %vm665_vm2 = vweird.f32 %v658_v24 }
 0x15f   : > { %v1364_v25 = vpop.eup %1363 }
 0x160   : > { %v660_v26 = vmul.f32 %v1364_v25, %v658_v24  ;;  %vm666_vm1 = vweird.f32 %v1364_v25 }
 0x161   : > { %vm667_vm3 = vmor %vm665_vm2, %vm666_vm1 }
 0x162   : > { %v661_v27 = vmul.f32 %v1364_v25, %v660_v26 }
 0x164   : > { %v662_v28 = vmul.f32 0.5, %v661_v27 }
 0x166   : > { %v663_v29 = vsub.f32 1.5, %v662_v28 }
 0x168   : > { %v664_v30 = vmul.f32 %v1364_v25, %v663_v29 }
 0x16a   : > { %v668_v31 = vsel %vm667_vm3, %v1364_v25, %v664_v30 }
 0x16b   : > { %v669_v32 = vmul.f32 %v668_v31, %v650_v9 }
 0x16d   : > { %702 = vmatmul.f32.vlgmr.msra.gmra.mxu1 %v669_v32 }
 0x1ea   : > { %v703_v33 = vpop.f32.mrf.mxu1 }
 0x1eb   : > { %706 = vst [vmem:[#allocation16] sm:$0xff] %v703_v33 }
 0x1ec PF: > { %v724_v34 = vld [vmem:[%s2021_s19 + $0x78] sm:$0xff]  ;;  %v723_v35 = vld [vmem:[%s2021_s19 + $0x70] sm:$0xff]  ;;  %v722_v36 = vld [vmem:[%s2021_s19 + $0x68] sm:$0xff]  ;;  %v1775_v51 = vmov 8.0   ;;  %s1776_s28 = smov [#allocation15]   ;;  %s2249_s11 = sld [smem:[#allocation39_spill]] }
 0x1ed   : > { %726 = vmatpush.msra.mxu0 %v724_v34  ;;  %v721_v37 = vld [vmem:[%s2021_s19 + $0x60] sm:$0xff]  ;;  %v720_v38 = vld [vmem:[%s2021_s19 + $0x58] sm:$0xff]  ;;  %v719_v39 = vld [vmem:[%s2021_s19 + $0x50] sm:$0xff]  ;;  %1366 = vrcp.f32 %v1775_v51  ;;  %s897_s5 = sshll.u32 %s1776_s28, 4  ;;  %s2250_s8 = sld [smem:[#allocation40_spill]]  ;;  %s898_s5 = int_to_ptr.vmem [resolvable:$true] %s897_s5 }
 0x1ee   : > { %v718_v40 = vld [vmem:[%s2021_s19 + $0x48] sm:$0xff]  ;;  %v717_v41 = vld [vmem:[%s2021_s19 + $0x40] sm:$0xff]  ;;  %v716_v42 = vld [vmem:[%s2021_s19 + $0x38] sm:$0xff]  ;;  %s1777_s21 = smov [#allocation16]   ;;  %s1224_s16 = sshll.u32 %s1760_s20, 3 }
 0x1ef   : > { %727 = vmatpush.msra.mxu0 %v723_v35  ;;  %v715_v43 = vld [vmem:[%s2021_s19 + $0x30] sm:$0xff]  ;;  %v714_v44 = vld [vmem:[%s2021_s19 + $0x28] sm:$0xff]  ;;  %v713_v45 = vld [vmem:[%s2021_s19 + $0x20] sm:$0xff]  ;;  %s2251_s10 = sld [smem:[#allocation41_spill]]  ;;  %s927_s28 = sshll.u32 %s2046_s15, 4  ;;  %s928_s28 = int_to_ptr.vmem [resolvable:$true] %s927_s28 }
 0x1f0   : > { %v712_v46 = vld [vmem:[%s2021_s19 + $0x18] sm:$0xff]  ;;  %v711_v47 = vld [vmem:[%s2021_s19 + $0x10] sm:$0xff]  ;;  %v710_v48 = vld [vmem:[%s2021_s19 + $0x8] sm:$0xff]  ;;  %s943_s29 = sshll.u32 %s2048_s22, 4  ;;  %s880_s20 = scalar_lea.sflag [#allocation5], %s2017_s0  ;;  %s2130_s29 = int_to_ptr.vmem [resolvable:$true] %s943_s29 }
 0x1f1   : > { %728 = vmatpush.msra.mxu0 %v722_v36  ;;  %v709_v49 = vld [vmem:[%s2021_s19] sm:$0xff]  ;;  %v707_v50 = vld [vmem:[#allocation2] sm:$0xff]  ;;  %v800_v60 = vld [vmem:[%s2030_s27 + $0x70] sm:$0xff] }
 0x1f2   : > { %v2068_v53 = vld [vmem:[%s2027_s30] sm:$0x7]  ;;  %v799_v62 = vld [vmem:[%s2030_s27 + $0x68] sm:$0xff]  ;;  %v798_v1 = vld [vmem:[%s2030_s27 + $0x60] sm:$0xff]  ;;  %s899_s14 = sshll.u32 %s2249_s11, 4  ;;  %s911_s30 = sshll.u32 %s1777_s21, 4  ;;  %s900_s14 = int_to_ptr.hbm [resolvable:$true] %s899_s14  ;;  %s912_s30 = int_to_ptr.vmem [resolvable:$true] %s911_s30 }
 0x1f3   : > { %729 = vmatpush.msra.mxu0 %v721_v37  ;;  %v1367_v52 = vpop.eup %1366  ;;  %v725_v55 = vperm.slane %v2068_v53, 0  ;;  %v801_v56 = vld [vmem:[%s2030_s27 + $0x78] sm:$0xff]  ;;  %v796_v6 = vld [vmem:[%s2030_s27 + $0x50] sm:$0xff]  ;;  %v795_v8 = vld [vmem:[%s2030_s27 + $0x48] sm:$0xff]  ;;  %v781_v37 = vperm.slane %v2068_v53, 1  ;;  %s913_s19 = sshll.u32 %s2250_s8, 4  ;;  %s914_s19 = int_to_ptr.hbm [resolvable:$true] %s913_s19 }
 0x1f4   : > { %v753_v54 = vmul.f32 8.0, %v1367_v52  ;;  %806 = vmatpush.msra.mxu1 %v801_v56  ;;  %v797_v3 = vld [vmem:[%s2030_s27 + $0x58] sm:$0xff]  ;;  %vm757_vm4 = vweird.f32 %v1367_v52  ;;  %v794_v10 = vld [vmem:[%s2030_s27 + $0x40] sm:$0xff]  ;;  %v792_v14 = vld [vmem:[%s2030_s27 + $0x30] sm:$0xff]  ;;  %1254 = dma.vmem_to_hbm [thread:$0]  (%p314_p2), %s898_s5, 128, %s900_s14, [#allocation5]  }
 0x1f5   : > { %730 = vmatpush.msra.mxu0 %v720_v38  ;;  %v793_v12 = vld [vmem:[%s2030_s27 + $0x38] sm:$0xff]  ;;  %v791_v16 = vld [vmem:[%s2030_s27 + $0x28] sm:$0xff]  ;;  %v790_v18 = vld [vmem:[%s2030_s27 + $0x20] sm:$0xff]  ;;  %1256 = dma.vmem_to_hbm [thread:$0]  (%p314_p2), %s912_s30, 128, %s914_s19, [#allocation17]  }
 0x1f6   : > { %v754_v58 = vsub.f32 1.0, %v753_v54  ;;  %807 = vmatpush.msra.mxu1 %v800_v60  ;;  %v789_v20 = vld [vmem:[%s2030_s27 + $0x18] sm:$0xff]  ;;  %v788_v22 = vld [vmem:[%s2030_s27 + $0x10] sm:$0xff]  ;;  %v787_v24 = vld [vmem:[%s2030_s27 + $0x8] sm:$0xff]  ;;  %s925_s12 = scalar_lea.hbm %s2251_s10, %s1224_s16 }
 0x1f7   : > { %731 = vmatpush.msra.mxu0 %v719_v39  ;;  %v786_v26 = vld [vmem:[%s2030_s27] sm:$0xff]  ;;  %v851_v54 = vld [vmem:[%s2044_s9 + $0x48] sm:$0xff]  ;;  %v849_v56 = vld [vmem:[%s2044_s9 + $0x38] sm:$0xff]  ;;  %s929_s5 = sshll.u32 %s925_s12, 4  ;;  %s930_s5 = int_to_ptr.hbm [resolvable:$true] %s929_s5 }
 0x1f8   : > { %v755_v63 = vmul.f32 %v1367_v52, %v754_v58  ;;  %808 = vmatpush.msra.mxu1 %v799_v62  ;;  %v847_v58 = vld [vmem:[%s2044_s9 + $0x28] sm:$0xff]  ;;  %v845_v60 = vld [vmem:[%s2044_s9 + $0x18] sm:$0xff]  ;;  %s1652_s11 = sshra.s32 %s930_s5, 4  ;;  %s1653_s11 = int_to_ptr.hbm [resolvable:$true] %s1652_s11 }
 0x1f9   : > { %732 = vmatpush.msra.mxu0 %v718_v40  ;;  %v783_v40 = vperm.slane %v2068_v53, 2  ;;  %v852_v53 = vld [vmem:[%s2044_s9 + $0x50] sm:$0xff]  ;;  %v843_v62 = vld [vmem:[%s2044_s9 + $0x8] sm:$0xff]  ;;  %s1654_s14 = scalar_lea.hbm %s1653_s11, 8  ;;  %p1659_p12 = scmp.lt.s32.totalorder %s1653_s11, %s2251_s10 }
 0x1fa   : > { %809 = vmatpush.msra.mxu1 %v798_v1  ;;  %v756_v4 = vadd.f32 %v1367_v52, %v755_v63  ;;  %v842_v63 = vld [vmem:[%s2044_s9] sm:$0xff]  ;;  %p1655_p4 = scmp.ne.s32.totalorder %s1653_s11, %s1654_s14 }
 0x1fb   : > { %733 = vmatpush.msra.mxu0 %v717_v41 }
 0x1fc   : > { %810 = vmatpush.msra.mxu1 %v797_v3  ;;  %v758_v9 = vsel %vm757_vm4, %v1367_v52, %v756_v4  ;;  %v853_v52 = vld [vmem:[%s2044_s9 + $0x58] sm:$0xff]  ;;  %p1656_p10 = pnand %p1655_p4, %p1920_p3 }
 0x1fd   : > { %734 = vmatpush.msra.mxu0 %v716_v42 }
 0x1fe   : > { %811 = vmatpush.msra.mxu1 %v796_v6  ;;  %p1657_p11 = pneg %p1656_p10 }
 0x1ff   : > { %735 = vmatpush.msra.mxu0 %v715_v43 }
 0x200   : > { %812 = vmatpush.msra.mxu1 %v795_v8 }
 0x201   : > { %736 = vmatpush.msra.mxu0 %v714_v44  ;;  %v857_v44 = vld [vmem:[%s2044_s9 + $0x78] sm:$0xff] }
 0x202   : > { %813 = vmatpush.msra.mxu1 %v794_v10  ;;  %858 = vmatpush.msra.mxu2 %v857_v44 }
 0x203   : > { %737 = vmatpush.msra.mxu0 %v713_v45  ;;  %v856_v45 = vld [vmem:[%s2044_s9 + $0x70] sm:$0xff] }
 0x204   : > { %814 = vmatpush.msra.mxu1 %v793_v12  ;;  %859 = vmatpush.msra.mxu2 %v856_v45 }
 0x205   : > { %738 = vmatpush.msra.mxu0 %v712_v46  ;;  %v855_v46 = vld [vmem:[%s2044_s9 + $0x68] sm:$0xff] }
 0x206   : > { %815 = vmatpush.msra.mxu1 %v792_v14  ;;  %860 = vmatpush.msra.mxu2 %v855_v46 }
 0x207   : > { %739 = vmatpush.msra.mxu0 %v711_v47  ;;  %v854_v47 = vld [vmem:[%s2044_s9 + $0x60] sm:$0xff] }
 0x208   : > { %816 = vmatpush.msra.mxu1 %v791_v16  ;;  %861 = vmatpush.msra.mxu2 %v854_v47 }
 0x209   : > { %740 = vmatpush.msra.mxu0 %v710_v48  ;;  %v1365_v48 = vld [vmem:[%s619_s13] ss:$0 sm:$0xff] }
 0x20a   : > { %817 = vmatpush.msra.mxu1 %v790_v18  ;;  %862 = vmatpush.msra.mxu2 %v853_v52 }
 0x20b   : > { %741 = vmatpush.msra.mxu0 %v709_v49 }
 0x20c   : > { %742 = vmatmul.f32.vlgmr.msra.gmra.mxu0 %v707_v50  ;;  %818 = vmatpush.msra.mxu1 %v789_v20 }
 0x20d   : > { %863 = vmatpush.msra.mxu2 %v852_v53 }
 0x20e   : > { %819 = vmatpush.msra.mxu1 %v788_v22 }
 0x20f   : > { %864 = vmatpush.msra.mxu2 %v851_v54 }
 0x210   : > { %820 = vmatpush.msra.mxu1 %v787_v24 }
 0x212   : > { %821 = vmatpush.msra.mxu1 %v786_v26 }
 0x289   : > { %v743_v57 = vpop.f32.mrf.mxu0 }
 0x28a   : > { %v744_v59 = vadd.f32 %v743_v57, %v725_v55  ;;  %v850_v55 = vld [vmem:[%s2044_s9 + $0x40] sm:$0xff]  ;;  %v848_v57 = vld [vmem:[%s2044_s9 + $0x30] sm:$0xff] }
 0x28b   : > { %865 = vmatpush.msra.mxu2 %v850_v55 }
 0x28c   : > { %v746_v61 = vrot.slane %v744_v59, 4 }
 0x28d   : > { %866 = vmatpush.msra.mxu2 %v849_v56 }
 0x28e   : > { %v747_v0 = vadd.f32 %v746_v61, %v744_v59  ;;  %v844_v61 = vld [vmem:[%s2044_s9 + $0x10] sm:$0xff] }
 0x28f   : > { %867 = vmatpush.msra.mxu2 %v848_v57 }
 0x290   : > { %v748_v2 = vrot.slane %v747_v0, 2 }
 0x291   : > { %868 = vmatpush.msra.mxu2 %v847_v58 }
 0x292   : > { %v749_v5 = vadd.f32 %v748_v2, %v747_v0 }
 0x294   : > { %v750_v7 = vrot.slane %v749_v5, 1 }
 0x296   : > { %v751_v11 = vadd.f32 %v750_v7, %v749_v5 }
 0x298   : > { %v759_v13 = vmul.f32 %v758_v9, %v751_v11 }
 0x29a   : > { %v760_v15 = vsub.f32 %v744_v59, %v759_v13  ;;  %v846_v59 = vld [vmem:[%s2044_s9 + $0x20] sm:$0xff]  ;;  %s2252_s9 = sld [smem:[#allocation42_spill]] }
 0x29b   : > { %869 = vmatpush.msra.mxu2 %v846_v59 }
 0x29c   : > { %v761_v17 = vmul.f32 %v760_v15, %v760_v15 }
 0x29d   : > { %870 = vmatpush.msra.mxu2 %v845_v60 }
 0x29e   : > { %v762_v19 = vrot.slane %v761_v17, 4 }
 0x29f   : > { %871 = vmatpush.msra.mxu2 %v844_v61 }
 0x2a0   : > { %v763_v21 = vadd.f32 %v762_v19, %v761_v17  ;;  %s941_s25 = scalar_lea.hbm %s2252_s9, %s1224_s16 }
 0x2a1   : > { %872 = vmatpush.msra.mxu2 %v843_v62  ;;  %s945_s3 = sshll.u32 %s941_s25, 4  ;;  %s2132_s3 = int_to_ptr.hbm [resolvable:$true] %s945_s3 }
 0x2a2   : > { %v764_v23 = vrot.slane %v763_v21, 2 }
 0x2a3   : > { %873 = vmatpush.msra.mxu2 %v842_v63 }
 0x2a4   : > { %v765_v25 = vadd.f32 %v764_v23, %v763_v21 }
 0x2a6   : > { %v766_v27 = vrot.slane %v765_v25, 1 }
 0x2a8   : > { %v767_v28 = vadd.f32 %v766_v27, %v765_v25 }
 0x2aa   : > { %v768_v29 = vmul.f32 %v767_v28, %v758_v9 }
 0x2ac   : > { %v769_v30 = vadd.f32 1e-05, %v768_v29 }
 0x2ae   : > { %1368 = vrsqrt.f32 %v769_v30  ;;  %vm776_vm6 = vweird.f32 %v769_v30 }
 0x2b4   : > { %v1369_v31 = vpop.eup %1368 }
 0x2b5   : > { %v771_v32 = vmul.f32 %v1369_v31, %v769_v30  ;;  %vm777_vm5 = vweird.f32 %v1369_v31 }
 0x2b6   : > { %vm778_vm7 = vmor %vm776_vm6, %vm777_vm5 }
 0x2b7   : > { %v772_v33 = vmul.f32 %v1369_v31, %v771_v32 }
 0x2b9   : > { %v773_v34 = vmul.f32 0.5, %v772_v33 }
 0x2bb   : > { %v774_v35 = vsub.f32 1.5, %v773_v34 }
 0x2bd   : > { %v775_v36 = vmul.f32 %v1369_v31, %v774_v35 }
 0x2bf   : > { %v779_v38 = vsel %vm778_vm7, %v1369_v31, %v775_v36 }
 0x2c0   : > { %v780_v39 = vmul.f32 %v779_v38, %v760_v15 }
 0x2c2   : > { %v782_v41 = vmul.f32 %v781_v37, %v780_v39 }
 0x2c4   : > { %v784_v42 = vadd.f32 %v783_v40, %v782_v41 }
 0x2c6   : > { %v785_v43 = vmax.f32 %v784_v42, 0.0 }
 0x2c8   : > { %822 = vmatmul.f32.vlgmr.msra.gmra.mxu1 %v785_v43 }
 0x345   : > { %v823_v49 = vpop.f32.mrf.mxu1 }
 0x346   : > { %v824_v50 = vadd.f32 %v1365_v48, %v823_v49 }
 0x348   : > { %v826_v51 = vmul.f32 %v824_v50, %v824_v50 }
 0x34a   : > { %827 = vadd.xlane.f32.xlu0 %v826_v51 }
 0x3bd   : > { %v828_v0 = vpop.xlane.xlu0 %827 }
 0x3be   : > { %v829_v1 = vmax.f32 %v828_v0, 1e-24 }
 0x3c0   : > { %1370 = vrsqrt.f32 %v829_v1  ;;  %vm836_vm9 = vweird.f32 %v829_v1 }
 0x3c6   : > { %v1371_v2 = vpop.eup %1370 }
 0x3c7   : > { %v831_v3 = vmul.f32 %v1371_v2, %v829_v1  ;;  %vm837_vm8 = vweird.f32 %v1371_v2 }
 0x3c8   : > { %vm838_vm10 = vmor %vm836_vm9, %vm837_vm8 }
 0x3c9   : > { %v832_v4 = vmul.f32 %v1371_v2, %v831_v3 }
 0x3cb   : > { %v833_v5 = vmul.f32 0.5, %v832_v4 }
 0x3cd   : > { %v834_v6 = vsub.f32 1.5, %v833_v5 }
 0x3cf   : > { %v835_v7 = vmul.f32 %v1371_v2, %v834_v6 }
 0x3d1   : > { %v839_v8 = vsel %vm838_vm10, %v1371_v2, %v835_v7 }
 0x3d2   : > { %v840_v9 = vmul.f32 %v839_v8, %v824_v50 }
 0x3d4   : > { %841 = vst [vmem:[%s2048_s22] sm:$0xff] %v840_v9  ;;  %874 = vmatmul.f32.vlgmr.msra.gmra.mxu2 %v840_v9  ;;  %s1658_s22 = scalar_lea.hbm %s2251_s10, 40 }
 0x3d5   : > { %p1660_p13 = scmp.lt.s32.totalorder %s1658_s22, %s1654_s14 }
 0x3d7   : > { %p1661_p0 = por %p1660_p13, %p1659_p12 }
 0x3d9   : > { %p1662_p5 = pnand %p1661_p0, %p1657_p11 }
 0x457   : > { %v875_v10 = vpop.f32.mrf.mxu2 }
 0x458   : > { %878 = vst [vmem:[%s2046_s15] sm:$0xff] %v875_v10 }
 0x459   : > { %1665 = shalt.err (!%p1662_p5)
}
 0x45a   : > { %1257 = dma.vmem_to_hbm [thread:$0]  (%p1920_p3), %s928_s28, 128, %s930_s5, %s880_s20  }
 0x45b   : > { %s1680_s0 = sshra.s32 %s2132_s3, 4  ;;  %s1686_s16 = scalar_lea.hbm %s2252_s9, 40  ;;  %s1681_s0 = int_to_ptr.hbm [resolvable:$true] %s1680_s0 }
 0x45c   : > { %s1682_s15 = scalar_lea.hbm %s1681_s0, 8  ;;  %p1687_p8 = scmp.lt.s32.totalorder %s1681_s0, %s2252_s9 }
 0x45d   : > { %p1683_p7 = scmp.ne.s32.totalorder %s1681_s0, %s1682_s15  ;;  %p1688_p4 = scmp.lt.s32.totalorder %s1686_s16, %s1682_s15 }
 0x45f   : > { %p1684_p9 = pnand %p1683_p7, %p1920_p3  ;;  %p1689_p10 = por %p1688_p4, %p1687_p8 }
 0x461   : > { %p1685_p1 = pneg %p1684_p9 }
 0x463   : > { %p1690_p11 = pnand %p1689_p10, %p1685_p1 }
 0x465   : > { %1693 = shalt.err (!%p1690_p11)
}
 0x466   : > { %1258 = dma.vmem_to_hbm [thread:$0]  (%p1920_p3), %s2130_s29, 128, %s2132_s3, %s880_s20  }
 0x467   : > { %1735 = dma.done.wait (%p314_p2), [#allocation5], 128  }
 0x468   : > { %1737 = vsyncadd (%p314_p2), [#allocation5], 4294967168 }
 0x469   : > { %1739 = dma.done.wait (%p314_p2), [#allocation17], 128  }
 0x46a   : > { %1741 = vsyncadd (%p314_p2), [#allocation17], 4294967168 }
 0x46b PF: > { %s2254_s12 = sld [smem:[#allocation29_spill]] }
 0x471   : > { %p1306_p12 = scmp.ge.s32.totalorder %s2254_s12, 2  ;;  %s2256_s13 = sadd.s32 4294967294, %s2254_s12  }
 0x472   : > { %s967_s25 = sand.u32 1, %s2256_s13  }
 0x473   : > { %p1289_p3 = pnand %p1306_p12, %p1882_p6  ;;  %s968_s17 = scalar_lea.sflag [#allocation5], %s967_s25 }
 0x475   : > { %p1290_p13 = pneg %p1289_p3 }
 0x477   : > { %1743 = dma.done.wait (%p1290_p13), %s968_s17, 256  }
 0x478   : > { %1745 = vsyncadd (%p1290_p13), %s968_s17, 4294967040  ;;  %s32_s22 = sadd.s32 1, %s2254_s12   ;;  %s2257_s28 = sld [smem:[#allocation27_spill]] }
 0x479   : > { %p29_p0 = scmp.ge.s32.totalorder %s32_s22, 7   ;;  %s2258_s19 = sld [smem:[#allocation33_spill]] }
 0x47a   : > { %s2259_s20 = sld [smem:[#allocation28_spill]]  ;;  %s2261_s17 = smov %s1752_s18 }
 0x47b   : > { %s2260_s21 = sld [smem:[#allocation31_spill]]  ;;  %31 = sbr.rel (!%p29_p0) target bundleno = 20 (0x14), region = 185 }
 0x47e   : > { %s2262_s18 = smov %s2257_s28 }
 0x480   :  { %984 = vsyncpa [#allocation4], 1 }
 0x481   :  { %986 = vsyncpa [#allocation4 + $0x1], 1 }
 0x482   :  { %987 = vsyncpa [#allocation7], 1 }
 0x483   :  { %988 = vsyncpa [#allocation10], 1 }
 0x484   :  { %990 = vsyncpa [#allocation10 + $0x1], 1 }
 0x485   :  { %991 = vsyncpa [#allocation13], 1 }
 0x486   :  { %993 = vsyncpa [#allocation13 + $0x1], 1 }
 0x487   :  { %994 = vsyncpa [#allocation5], 1 }
 0x488   :  { %996 = vsyncpa [#allocation5 + $0x1], 1 }
 0x489   :  { %997 = vsyncpa [#allocation17], 1 }

</bundles_post_ra>
